<compile_context>
chip_gen: v7x
topology: tpu7x:2x2x1
jax: 0.10.0
libtpu: 0.0.40
codegen_flags: <defaults>
</compile_context>

<pallas_src>
import jax
import jax.numpy as jnp
from jax.experimental import pallas as pl
from jax.experimental.pallas import tpu as pltpu

EPS = 1e-8
LANES = 128
SUBLANES = 8


def _cdiv(a, b):
    return -(-a // b)


def _bce_partial_kernel(pred_ref, tgt_ref, out_ref):
    # torch.clamp(p, eps, 1 - eps): in float32 the upper bound rounds to 1.0,
    # matching PyTorch f32 semantics exactly.
    p = jnp.clip(pred_ref[...], EPS, 1.0 - EPS)
    t = tgt_ref[...]
    # loss = -(t*log(p) + (1-t)*log(1-p))  (EPS/VPU work; hidden under the DMA)
    loss = -(t * jnp.log(p) + (1.0 - t) * jnp.log(1.0 - p))
    rows = loss.shape[0]
    # Reduce the tile down to one (8,128) vreg of partial sums (sublane-preserving
    # reshape, then vreg-wise adds) and store it lane-dense.
    partial = jnp.sum(loss.reshape(rows // SUBLANES, SUBLANES, LANES), axis=0)
    out_ref[...] = partial.reshape(1, SUBLANES, LANES)


def custom_bce_loss_mean(predictions, targets, *, max_block_rows=2048):
    """Mean-reduced BCE loss (CustomBCELoss defaults) over same-shape arrays."""
    if predictions.shape != targets.shape:
        raise ValueError(
            f"Shape mismatch: predictions shape {predictions.shape} != "
            f"targets shape {targets.shape}"
        )
    total_elems = int(predictions.size)

    p = predictions.reshape(-1).astype(jnp.float32)
    t = targets.reshape(-1).astype(jnp.float32)

    # Pick the largest block needed/allowed: rows are a multiple of 8 (sublanes),
    # capped at max_block_rows (2048 rows x 128 lanes x 4 B = 1 MiB per input per
    # block; x2 inputs x2 pipeline buffers = 4 MiB, within every generation's
    # default scoped VMEM).
    rows_needed = _cdiv(total_elems, LANES)
    block_rows = min(max_block_rows, _cdiv(rows_needed, SUBLANES) * SUBLANES)
    num_blocks = _cdiv(rows_needed, block_rows)
    padded_rows = num_blocks * block_rows

    pad = padded_rows * LANES - total_elems
    if pad:
        # Zero padding contributes exactly 0 loss (see header comment).
        p = jnp.pad(p, (0, pad))
        t = jnp.pad(t, (0, pad))
    p2 = p.reshape(padded_rows, LANES)
    t2 = t.reshape(padded_rows, LANES)

    partials = pl.pallas_call(
        _bce_partial_kernel,
        out_shape=jax.ShapeDtypeStruct((num_blocks, SUBLANES, LANES), jnp.float32),
        grid_spec=pltpu.PrefetchScalarGridSpec(
            num_scalar_prefetch=0,
            grid=(num_blocks,),
            in_specs=[
                pl.BlockSpec((block_rows, LANES), lambda i: (i, 0)),
                pl.BlockSpec((block_rows, LANES), lambda i: (i, 0)),
            ],
            out_specs=pl.BlockSpec((1, SUBLANES, LANES), lambda i: (i, 0, 0)),
        ),
        compiler_params=pltpu.CompilerParams(
            # Independent per-block partials -> megacore sharding on v7x.
            dimension_semantics=("parallel",),
        ),
        cost_estimate=pl.CostEstimate(
            flops=6 * padded_rows * LANES,
            transcendentals=2 * padded_rows * LANES,
            bytes_accessed=2 * 4 * padded_rows * LANES
            + 4 * num_blocks * SUBLANES * LANES,
        ),
    )(p2, t2)

    # reduction == 'mean': divide by the number of *original* elements.
    return jnp.sum(partials) / total_elems


def _reference(predictions, targets):
    p = jnp.clip(predictions.astype(jnp.float32), EPS, 1.0 - EPS)
    t = targets.astype(jnp.float32)
    return jnp.mean(-(t * jnp.log(p) + (1.0 - t) * jnp.log(1.0 - p)))


if __name__ == "__main__":
    key = jax.random.PRNGKey(0)
    k1, k2, k3, k4 = jax.random.split(key, 4)

    # Small shapes consistent with the module: (batch, classes).
    N, C = 16, 128
    predictions = jax.random.uniform(k1, (N, C), dtype=jnp.float32)
    targets = (jax.random.uniform(k2, (N, C)) > 0.5).astype(jnp.float32)

    loss = custom_bce_loss_mean(predictions, targets)
    jax.block_until_ready(loss)
    ref = _reference(predictions, targets)
    assert jnp.allclose(loss, ref, rtol=1e-5, atol=1e-6), (loss, ref)

    # Ragged shape exercising the flatten + zero-padding path.
    N2, C2 = 7, 33
    predictions2 = jax.random.uniform(k3, (N2, C2), dtype=jnp.float32)
    targets2 = (jax.random.uniform(k4, (N2, C2)) > 0.5).astype(jnp.float32)

    loss2 = custom_bce_loss_mean(predictions2, targets2)
    jax.block_until_ready(loss2)
    ref2 = _reference(predictions2, targets2)
    assert jnp.allclose(loss2, ref2, rtol=1e-5, atol=1e-6), (loss2, ref2)

    print("KERNEL_OK")
</pallas_src>

<mosaic_0001>
module attributes {stable_mosaic.version = 11 : i64} {
  func.func @_bce_partial_kernel(%arg0: i32, %arg1: memref<16x128xf32, #tpu.memory_space<vmem>>, %arg2: memref<16x128xf32, #tpu.memory_space<vmem>>, %arg3: memref<1x8x128xf32, #tpu.memory_space<vmem>>) attributes {dimension_semantics = [#tpu.dimension_semantics<parallel>], iteration_bounds = array<i64: 1>, scalar_prefetch = 0 : i64, scratch_operands = 0 : i64, tpu.core_type = #tpu.core_type<tc>, window_params = [{transform_indices = @transform_0, window_bounds = array<i64: 16, 128>}, {transform_indices = @transform_1, window_bounds = array<i64: 16, 128>}, {transform_indices = @transform_2, window_bounds = array<i64: 1, 8, 128>}]} {
    %c0 = arith.constant 0 : index
    %c0_0 = arith.constant 0 : index
    %0 = vector.load %arg1[%c0, %c0_0] : memref<16x128xf32, #tpu.memory_space<vmem>>, vector<16x128xf32>
    %cst = arith.constant 9.99999993E-9 : f32
    %cst_1 = arith.constant 1.000000e+00 : f32
    %1 = vector.broadcast %cst : f32 to vector<16x128xf32>
    %2 = arith.maximumf %1, %0 : vector<16x128xf32>
    %3 = vector.broadcast %cst_1 : f32 to vector<16x128xf32>
    %4 = arith.minimumf %3, %2 : vector<16x128xf32>
    %c0_2 = arith.constant 0 : index
    %c0_3 = arith.constant 0 : index
    %5 = vector.load %arg2[%c0_2, %c0_3] : memref<16x128xf32, #tpu.memory_space<vmem>>, vector<16x128xf32>
    %6 = math.log %4 : vector<16x128xf32>
    %7 = arith.mulf %5, %6 : vector<16x128xf32>
    %cst_4 = arith.constant 1.000000e+00 : f32
    %8 = vector.broadcast %cst_4 : f32 to vector<16x128xf32>
    %9 = arith.subf %8, %5 : vector<16x128xf32>
    %cst_5 = arith.constant 1.000000e+00 : f32
    %10 = vector.broadcast %cst_5 : f32 to vector<16x128xf32>
    %11 = arith.subf %10, %4 : vector<16x128xf32>
    %12 = math.log %11 : vector<16x128xf32>
    %13 = arith.mulf %9, %12 : vector<16x128xf32>
    %14 = arith.addf %7, %13 : vector<16x128xf32>
    %cst_6 = arith.constant 0.000000e+00 : f32
    %15 = vector.broadcast %cst_6 : f32 to vector<16x128xf32>
    %16 = arith.subf %15, %14 : vector<16x128xf32>
    %17 = vector.shape_cast %16 : vector<16x128xf32> to vector<2x8x128xf32>
    %cst_7 = arith.constant dense<0.000000e+00> : vector<8x128xf32>
    %18 = vector.multi_reduction <add>, %17, %cst_7 [0] : vector<2x8x128xf32> to vector<8x128xf32>
    %19 = vector.shape_cast %18 : vector<8x128xf32> to vector<1x8x128xf32>
    %c0_8 = arith.constant 0 : index
    %c0_9 = arith.constant 0 : index
    %c0_10 = arith.constant 0 : index
    %20 = vector.load %arg3[%c0_8, %c0_9, %c0_10] : memref<1x8x128xf32, #tpu.memory_space<vmem>>, vector<1x8x128xf32>
    tpu.vector_store %arg3[%c0_8, %c0_9, %c0_10], %19 {strides = array<i32>} : memref<1x8x128xf32, #tpu.memory_space<vmem>>, vector<1x8x128xf32>,
    return
  }
  func.func @transform_0(%arg0: i32) -> (i32, i32) {
    %c0_i32 = arith.constant 0 : i32
    %c0_i32_0 = arith.constant 0 : i32
    return %arg0, %c0_i32 : i32, i32
  }
  func.func @transform_1(%arg0: i32) -> (i32, i32) {
    %c0_i32 = arith.constant 0 : i32
    %c0_i32_0 = arith.constant 0 : i32
    return %arg0, %c0_i32 : i32, i32
  }
  func.func @transform_2(%arg0: i32) -> (i32, i32, i32) {
    %c0_i32 = arith.constant 0 : i32
    %c0_i32_0 = arith.constant 0 : i32
    %c0_i32_1 = arith.constant 0 : i32
    return %arg0, %c0_i32, %c0_i32_0 : i32, i32, i32
  }
}

</mosaic_0001>

<bundles_post_ra>
// kernel: tpu_custom_call.1
= control target key start
LH: loop header
LB: loop body
LE: loop exit
PB: predicated region body
PF: predicated region fallthrough
CT: control target
= control target key end

     0   :  { %7 = vsyncpa [#allocation3], 0  ;;  %s227_s0 = inlined_call_operand.hbm [shape: f32[16,128], index: 0, kind: input, shape index: {}]   ;;  %s228_s1 = inlined_call_operand.hbm [shape: f32[16,128], index: 1, kind: input, shape index: {}]   ;;  %s229_s2 = inlined_call_operand.hbm [shape: f32[1,8,128], index: 2, kind: output, shape index: {}]  }
   0x1   :  { %8 = vsyncpa [#allocation6], 0 }
   0x2   :  { %9 = vsyncpa [#allocation4], 0  ;;  %s171_s9 = smov [#allocation2]   ;;  %s99_s13 = scalar_lea.hbm %s227_s0, 256 }
   0x3   :  { %s15_s10 = sshll.u32 %s171_s9, 4  ;;  %p100_p0 = scmp.ne.s32.totalorder %s227_s0, %s99_s13  ;;  %s16_s10 = int_to_ptr.vmem [resolvable:$true] %s15_s10 }
   0x4   :  { %p103_p1 = scmp.lt.u32.totalorder %s99_s13, %s227_s0 }
   0x6   :  { %p105_p2 = pnand %p103_p1, %p100_p0 }
   0x8   :  { %108 = shalt.err (!%p105_p2)
}
   0x9   :  { %s109_s18 = scalar_lea.vmem %s16_s10, 256  ;;  %p114_p4 = scmp.lt.s32.totalorder %s16_s10, %s16_s10 }
   0xa   :  { %p110_p3 = scmp.ne.s32.totalorder %s16_s10, %s109_s18  ;;  %p115_p5 = scmp.lt.s32.totalorder %s109_s18, %s109_s18 }
   0xc   :  { %p116_p6 = por %p115_p5, %p114_p4 }
   0xe   :  { %p117_p7 = pnand %p116_p6, %p110_p3 }
  0x10   :  { %120 = shalt.err (!%p117_p7)
}
  0x11   :  { %s172_s19 = smov 128   ;;  %s173_s20 = smov 8  }
  0x12   :  { %21 = dma.hbm_to_vmem [thread:$0]  %s227_s0, 256, %s16_s10, [#allocation3], %s172_s19, %s172_s19, %s173_s20  }
  0x13   :  { %s174_s23 = smov [#allocation5]   ;;  %s121_s27 = scalar_lea.hbm %s228_s1, 256 }
  0x14   :  { %s27_s24 = sshll.u32 %s174_s23, 4  ;;  %p122_p8 = scmp.ne.s32.totalorder %s228_s1, %s121_s27  ;;  %s28_s24 = int_to_ptr.vmem [resolvable:$true] %s27_s24 }
  0x15   :  { %p125_p9 = scmp.lt.u32.totalorder %s121_s27, %s228_s1 }
  0x17   :  { %p127_p10 = pnand %p125_p9, %p122_p8 }
  0x19   :  { %130 = shalt.err (!%p127_p10)
}
  0x1a   :  { %s131_s4 = scalar_lea.vmem %s28_s24, 256  ;;  %p136_p12 = scmp.lt.s32.totalorder %s28_s24, %s28_s24 }
  0x1b   :  { %p132_p11 = scmp.ne.s32.totalorder %s28_s24, %s131_s4  ;;  %p137_p13 = scmp.lt.s32.totalorder %s131_s4, %s131_s4 }
  0x1d   :  { %p138_p0 = por %p137_p13, %p136_p12 }
  0x1f   :  { %p139_p1 = pnand %p138_p0, %p132_p11 }
  0x21   :  { %142 = shalt.err (!%p139_p1)
}
  0x22   :  { %33 = dma.hbm_to_vmem [thread:$0]  %s228_s1, 256, %s28_s24, [#allocation6], %s172_s19, %s172_s19, %s173_s20  }
  0x23   :  { %165 = dma.done.wait [#allocation3], 256  }
  0x24   :  { %166 = vsyncadd [#allocation3], 4294967040 }
  0x25   :  { %167 = dma.done.wait [#allocation6], 256  }
  0x26   :  { %168 = vsyncadd [#allocation6], 4294967040  ;;  %v40_v0 = vld [vmem:[#allocation2] sm:$0xff]  ;;  %v41_v1 = vld [vmem:[#allocation2 + $0x8] sm:$0xff]  ;;  %s175_s1 = smov [#allocation7]  }
  0x27   :  { %v42_v2 = vmax.f32 %v40_v0, 1e-08  ;;  %v43_v3 = vmax.f32 %v41_v1, 1e-08  ;;  %v46_v8 = vld [vmem:[#allocation5] sm:$0xff]  ;;  %v47_v9 = vld [vmem:[#allocation5 + $0x8] sm:$0xff] }
  0x28   :  { %v54_v13 = vsub.f32 1.0, %v46_v8  ;;  %v55_v16 = vsub.f32 1.0, %v47_v9  ;;  %s76_s6 = sshll.u32 %s175_s1, 4  ;;  %s77_s6 = int_to_ptr.vmem [resolvable:$true] %s76_s6 }
  0x29   :  { %v44_v4 = vmin.f32 %v42_v2, 1.0  ;;  %v45_v5 = vmin.f32 %v43_v3, 1.0  ;;  %s143_s7 = scalar_lea.vmem %s77_s6, 128  ;;  %p148_p3 = scmp.lt.s32.totalorder %s77_s6, %s77_s6 }
  0x2a   :  { %p144_p2 = scmp.ne.s32.totalorder %s77_s6, %s143_s7  ;;  %p149_p4 = scmp.lt.s32.totalorder %s143_s7, %s143_s7 }
  0x2b   :  { %91 = vlog2.f32 %v44_v4  ;;  %v56_v6 = vsub.f32 1.0, %v44_v4  ;;  %v57_v7 = vsub.f32 1.0, %v45_v5 }
  0x2c   :  { %93 = vlog2.f32 %v45_v5  ;;  %p150_p5 = por %p149_p4, %p148_p3 }
  0x2d   :  { %95 = vlog2.f32 %v56_v6 }
  0x2e   :  { %97 = vlog2.f32 %v57_v7  ;;  %p151_p6 = pnand %p150_p5, %p144_p2 }
  0x35   :  { %v92_v10 = vpop.eup %91 }
  0x36   :  { %v94_v11 = vpop.eup %93  ;;  %v49_v12 = vmul.f32 0.6931472, %v92_v10 }
  0x37   :  { %v96_v14 = vpop.eup %95  ;;  %v51_v15 = vmul.f32 0.6931472, %v94_v11 }
  0x38   :  { %v98_v17 = vpop.eup %97  ;;  %v52_v18 = vmul.f32 %v49_v12, %v46_v8  ;;  %v59_v19 = vmul.f32 0.6931472, %v96_v14 }
  0x39   :  { %v53_v20 = vmul.f32 %v51_v15, %v47_v9  ;;  %v61_v21 = vmul.f32 0.6931472, %v98_v17 }
  0x3a   :  { %v62_v22 = vmul.f32 %v59_v19, %v54_v13 }
  0x3b   :  { %v63_v23 = vmul.f32 %v61_v21, %v55_v16 }
  0x3c   :  { %v64_v24 = vadd.f32 %v62_v22, %v52_v18 }
  0x3d   :  { %v65_v25 = vadd.f32 %v63_v23, %v53_v20 }
  0x3e   :  { %v66_v26 = vsub.f32 0.0, %v64_v24 }
  0x3f   :  { %v67_v27 = vsub.f32 0.0, %v65_v25 }
  0x41   :  { %v68_v28 = vadd.f32 %v67_v27, %v66_v26 }
  0x43   :  { %69 = vst [vmem:[#allocation7] sm:$0xff] %v68_v28 }
  0x44   :  { %154 = shalt.err (!%p151_p6)
}
  0x45   :  { %s155_s10 = scalar_lea.hbm %s229_s2, 128 }
  0x46   :  { %p156_p7 = scmp.ne.s32.totalorder %s229_s2, %s155_s10  ;;  %p159_p8 = scmp.lt.u32.totalorder %s155_s10, %s229_s2 }
  0x48   :  { %p161_p9 = pnand %p159_p8, %p156_p7 }
  0x4a   :  { %164 = shalt.err (!%p161_p9)
}
  0x4b   :  { %79 = dma.vmem_to_hbm [thread:$0]  %s77_s6, 128, %s229_s2, [#allocation4]  }
  0x4c   :  { %169 = dma.done.wait [#allocation4], 128  }
  0x4d   :  { %170 = vsyncadd [#allocation4], 4294967168 }
  0x4e   :  { %83 = vsyncpa [#allocation3], 1 }
  0x4f   :  { %84 = vsyncpa [#allocation6], 1 }
  0x50   :  { %85 = vsyncpa [#allocation4], 1 }

</bundles_post_ra>
